<compile_context>
chip_gen: v6e
topology: v6e:2x2x1
jax: 0.10.0
libtpu: 0.0.40
codegen_flags: <defaults>
</compile_context>

<pallas_src>
import jax
import jax.numpy as jnp
from jax.experimental import pallas as pl
from jax.experimental.pallas import tpu as pltpu

LANE = 128     # lane width: last-dim tiling unit
SUBLANE = 8    # sublane width: second-to-last-dim tiling unit


def _round_up(x, m):
    return ((x + m - 1) // m) * m


def actor_forward_kernel(state_ref, w1_ref, b1_ref, w2_ref, b2_ref, out_ref):
    """Fused MLP forward for one batch tile: tanh(tanh(x @ W1 + b1) @ W2 + b2).

    Weights/biases are VMEM-resident across the whole batch grid (constant
    index_map); only the [tile_m, S_pad] state tile and [tile_m, W_pad] output
    tile stream per grid step.  Matmuls run at the weights' storage dtype
    (f32 or bf16) with f32 accumulation; bias add + tanh stay in f32.
    """
    x = state_ref[...]                                            # [tm, S_pad] f32
    h1 = jnp.dot(x.astype(w1_ref.dtype), w1_ref[...],
                 preferred_element_type=jnp.float32)              # [tm, W_pad] f32
    h1 = jnp.tanh(h1 + b1_ref[...])
    h2 = jnp.dot(h1.astype(w2_ref.dtype), w2_ref[...],
                 preferred_element_type=jnp.float32)              # [tm, W_pad] f32
    h2 = jnp.tanh(h2 + b2_ref[...])
    out_ref[...] = h2.astype(out_ref.dtype)


def actor_forward(state, w1, b1, w2, b2, *,
                  weights_dtype=jnp.float32, tile_m=256):
    """state: [B, state_dim]; w1: [state_dim, net_width]; w2: [net_width, net_width].

    Returns tanh(tanh(state @ w1 + b1) @ w2 + b2) with shape [B, net_width].
    """
    B, S = state.shape
    W = w1.shape[1]
    assert w1.shape == (S, W) and w2.shape == (W, W)
    assert b1.shape == (1, W) and b2.shape == (1, W)

    # Lane-dense padded dims (zero K columns/rows contribute nothing to the
    # dots; zero-padded biases keep padded output columns at tanh(0)=0).
    S_pad = _round_up(S, LANE)
    W_pad = _round_up(W, LANE)
    # Batch tile: at most tile_m rows per grid step, sublane-aligned, and no
    # larger than the (padded) batch so tiny batches stay a single step.
    tm = min(tile_m, _round_up(B, SUBLANE))
    B_pad = _round_up(B, tm)

    state_p = jnp.zeros((B_pad, S_pad), jnp.float32).at[:B, :S].set(state)
    w1_p = jnp.zeros((S_pad, W_pad), weights_dtype).at[:S, :W].set(
        w1.astype(weights_dtype))
    w2_p = jnp.zeros((W_pad, W_pad), weights_dtype).at[:W, :W].set(
        w2.astype(weights_dtype))
    b1_p = jnp.zeros((1, W_pad), jnp.float32).at[:, :W].set(b1)
    b2_p = jnp.zeros((1, W_pad), jnp.float32).at[:, :W].set(b2)

    const = lambda i: (0, 0)     # weights/biases: same block every grid step

    out = pl.pallas_call(
        actor_forward_kernel,
        out_shape=jax.ShapeDtypeStruct((B_pad, W_pad), jnp.float32),
        grid_spec=pl.GridSpec(
            grid=(B_pad // tm,),
            in_specs=[
                pl.BlockSpec((tm, S_pad), lambda i: (i, 0)),   # state tile streams
                pl.BlockSpec((S_pad, W_pad), const),           # W1 resident
                pl.BlockSpec((1, W_pad), const),               # b1 resident
                pl.BlockSpec((W_pad, W_pad), const),           # W2 resident
                pl.BlockSpec((1, W_pad), const),               # b2 resident
            ],
            out_specs=pl.BlockSpec((tm, W_pad), lambda i: (i, 0)),
        ),
        compiler_params=pltpu.CompilerParams(
            # Batch axis is fully independent -> shard across TCs on v7x.
            dimension_semantics=("parallel",),
        ),
    )(state_p, w1_p, b1_p, w2_p, b2_p)

    return out[:B, :W]


def init_actor_params(key, state_dim, action_dim, net_width):
    """Deterministic PyTorch-style (uniform +-1/sqrt(fan_in)) init.

    Weights are returned pre-transposed to [in_dim, out_dim].
    """
    ks = jax.random.split(key, 6)

    def linear(kw, kb, fan_in, fan_out):
        bound = 1.0 / (fan_in ** 0.5)
        w = jax.random.uniform(kw, (fan_in, fan_out), jnp.float32, -bound, bound)
        b = jax.random.uniform(kb, (1, fan_out), jnp.float32, -bound, bound)
        return w, b

    w1, b1 = linear(ks[0], ks[1], state_dim, net_width)
    w2, b2 = linear(ks[2], ks[3], net_width, net_width)
    w3, b3 = linear(ks[4], ks[5], net_width, action_dim)  # unused in forward()
    return (w1, b1, w2, b2, w3, b3)


if __name__ == "__main__":
    # Small shapes consistent with the module's forward pass.
    state_dim = 32
    action_dim = 4
    net_width = 64

    key = jax.random.PRNGKey(0)
    k_state, k_state2, k_params = jax.random.split(key, 3)

    w1, b1, w2, b2, w3, b3 = init_actor_params(
        k_params, state_dim, action_dim, net_width
    )

    def ref_fwd(x):
        return jnp.tanh(jnp.tanh(x @ w1 + b1) @ w2 + b2)

    # Case 1: tiny batch (single grid step).
    state_small = jax.random.normal(k_state, (8, state_dim), dtype=jnp.float32)
    out_small = jax.block_until_ready(actor_forward(state_small, w1, b1, w2, b2))
    assert out_small.shape == (8, net_width)
    assert jnp.allclose(out_small, ref_fwd(state_small), atol=1e-5, rtol=1e-5)

    # Case 2: larger, non-aligned batch exercising the batch grid + padding.
    state_big = jax.random.normal(k_state2, (300, state_dim), dtype=jnp.float32)
    out_big = jax.block_until_ready(actor_forward(state_big, w1, b1, w2, b2))
    assert out_big.shape == (300, net_width)
    assert jnp.allclose(out_big, ref_fwd(state_big), atol=1e-5, rtol=1e-5)

    print("KERNEL_OK")
</pallas_src>

<mosaic_0001>
module attributes {stable_mosaic.version = 11 : i64} {
  func.func @actor_forward_kernel(%arg0: i32, %arg1: memref<8x128xf32, #tpu.memory_space<vmem>>, %arg2: memref<128x128xf32, #tpu.memory_space<vmem>>, %arg3: memref<1x128xf32, #tpu.memory_space<vmem>>, %arg4: memref<128x128xf32, #tpu.memory_space<vmem>>, %arg5: memref<1x128xf32, #tpu.memory_space<vmem>>, %arg6: memref<8x128xf32, #tpu.memory_space<vmem>>) attributes {dimension_semantics = [#tpu.dimension_semantics<parallel>], iteration_bounds = array<i64: 1>, scalar_prefetch = 0 : i64, scratch_operands = 0 : i64, tpu.core_type = #tpu.core_type<tc>, window_params = [{transform_indices = @transform_0, window_bounds = array<i64: 8, 128>}, {pipeline_mode = #tpu.pipeline_mode<synchronous>, transform_indices = @transform_1, window_bounds = array<i64: 128, 128>}, {pipeline_mode = #tpu.pipeline_mode<synchronous>, transform_indices = @transform_2, window_bounds = array<i64: 1, 128>}, {pipeline_mode = #tpu.pipeline_mode<synchronous>, transform_indices = @transform_3, window_bounds = array<i64: 128, 128>}, {pipeline_mode = #tpu.pipeline_mode<synchronous>, transform_indices = @transform_4, window_bounds = array<i64: 1, 128>}, {transform_indices = @transform_5, window_bounds = array<i64: 8, 128>}]} {
    %c0 = arith.constant 0 : index
    %c0_0 = arith.constant 0 : index
    %0 = vector.load %arg1[%c0, %c0_0] : memref<8x128xf32, #tpu.memory_space<vmem>>, vector<8x128xf32>
    %c0_1 = arith.constant 0 : index
    %c0_2 = arith.constant 0 : index
    %1 = vector.load %arg2[%c0_1, %c0_2] : memref<128x128xf32, #tpu.memory_space<vmem>>, vector<128x128xf32>
    %cst = arith.constant dense<0.000000e+00> : vector<8x128xf32>
    %2 = tpu.matmul %0, %1, %cst {dimension_numbers = #tpu.dot_dimension_numbers<[1], [0], [0], [1], [0, 0, 1, 1], [], []>} : vector<8x128xf32>, vector<128x128xf32>, vector<8x128xf32> -> vector<8x128xf32>
    %c0_3 = arith.constant 0 : index
    %c0_4 = arith.constant 0 : index
    %3 = vector.load %arg3[%c0_3, %c0_4] : memref<1x128xf32, #tpu.memory_space<vmem>>, vector<1x128xf32>
    %4 = vector.broadcast %3 : vector<1x128xf32> to vector<8x128xf32>
    %5 = arith.addf %2, %4 : vector<8x128xf32>
    %6 = math.tanh %5 : vector<8x128xf32>
    %c0_5 = arith.constant 0 : index
    %c0_6 = arith.constant 0 : index
    %7 = vector.load %arg4[%c0_5, %c0_6] : memref<128x128xf32, #tpu.memory_space<vmem>>, vector<128x128xf32>
    %cst_7 = arith.constant dense<0.000000e+00> : vector<8x128xf32>
    %8 = tpu.matmul %6, %7, %cst_7 {dimension_numbers = #tpu.dot_dimension_numbers<[1], [0], [0], [1], [0, 0, 1, 1], [], []>} : vector<8x128xf32>, vector<128x128xf32>, vector<8x128xf32> -> vector<8x128xf32>
    %c0_8 = arith.constant 0 : index
    %c0_9 = arith.constant 0 : index
    %9 = vector.load %arg5[%c0_8, %c0_9] : memref<1x128xf32, #tpu.memory_space<vmem>>, vector<1x128xf32>
    %10 = vector.broadcast %9 : vector<1x128xf32> to vector<8x128xf32>
    %11 = arith.addf %8, %10 : vector<8x128xf32>
    %12 = math.tanh %11 : vector<8x128xf32>
    %c0_10 = arith.constant 0 : index
    %c0_11 = arith.constant 0 : index
    %13 = vector.load %arg6[%c0_10, %c0_11] : memref<8x128xf32, #tpu.memory_space<vmem>>, vector<8x128xf32>
    tpu.vector_store %arg6[%c0_10, %c0_11], %12 {strides = array<i32>} : memref<8x128xf32, #tpu.memory_space<vmem>>, vector<8x128xf32>,
    return
  }
  func.func @transform_0(%arg0: i32) -> (i32, i32) {
    %c0_i32 = arith.constant 0 : i32
    %c0_i32_0 = arith.constant 0 : i32
    return %arg0, %c0_i32 : i32, i32
  }
  func.func @transform_1(%arg0: i32) -> (i32, i32) {
    %c0_i32 = arith.constant 0 : i32
    %c0_i32_0 = arith.constant 0 : i32
    %c0_i32_1 = arith.constant 0 : i32
    return %c0_i32, %c0_i32_0 : i32, i32
  }
  func.func @transform_2(%arg0: i32) -> (i32, i32) {
    %c0_i32 = arith.constant 0 : i32
    %c0_i32_0 = arith.constant 0 : i32
    %c0_i32_1 = arith.constant 0 : i32
    return %c0_i32, %c0_i32_0 : i32, i32
  }
  func.func @transform_3(%arg0: i32) -> (i32, i32) {
    %c0_i32 = arith.constant 0 : i32
    %c0_i32_0 = arith.constant 0 : i32
    %c0_i32_1 = arith.constant 0 : i32
    return %c0_i32, %c0_i32_0 : i32, i32
  }
  func.func @transform_4(%arg0: i32) -> (i32, i32) {
    %c0_i32 = arith.constant 0 : i32
    %c0_i32_0 = arith.constant 0 : i32
    %c0_i32_1 = arith.constant 0 : i32
    return %c0_i32, %c0_i32_0 : i32, i32
  }
  func.func @transform_5(%arg0: i32) -> (i32, i32) {
    %c0_i32 = arith.constant 0 : i32
    %c0_i32_0 = arith.constant 0 : i32
    return %arg0, %c0_i32 : i32, i32
  }
}

</mosaic_0001>

<bundles_post_ra>
// kernel: tpu_custom_call.1
= control target key start
LH: loop header
LB: loop body
LE: loop exit
PB: predicated region body
PF: predicated region fallthrough
CT: control target
= control target key end

     0   :  { %10 = vsyncpa [#allocation3], 0  ;;  %s560_s0 = inlined_call_operand.hbm [shape: f32[8,128], index: 0, kind: input, shape index: {}]   ;;  %s561_s1 = inlined_call_operand.hbm [shape: f32[128,128], index: 1, kind: input, shape index: {}]   ;;  %s562_s2 = inlined_call_operand.vmem [shape: f32[1,128], index: 2, kind: input, shape index: {}]   ;;  %s563_s3 = inlined_call_operand.hbm [shape: f32[128,128], index: 3, kind: input, shape index: {}]   ;;  %s564_s4 = inlined_call_operand.vmem [shape: f32[1,128], index: 4, kind: input, shape index: {}]   ;;  %s565_s5 = inlined_call_operand.hbm [shape: f32[8,128], index: 5, kind: output, shape index: {}]  }
   0x1   :  { %11 = vsyncpa [#allocation6], 0 }
   0x2   :  { %12 = vsyncpa [#allocation4], 0  ;;  %s470_s18 = smov [#allocation5]  }
   0x3   :  { %s28_s19 = sshll.u32 %s470_s18, 4  ;;  %s29_s19 = int_to_ptr.vmem [resolvable:$true] %s28_s19 }
   0x4   :  { %s392_s20 = scalar_lea.vmem %s29_s19, 2048  ;;  %p397_p1 = scmp.lt.s32.totalorder %s29_s19, %s29_s19 }
   0x5   :  { %p393_p0 = scmp.ne.s32.totalorder %s29_s19, %s392_s20  ;;  %p398_p2 = scmp.lt.s32.totalorder %s392_s20, %s392_s20 }
   0x7   :  { %p399_p3 = por %p398_p2, %p397_p1 }
   0x9   :  { %p400_p4 = pnand %p399_p3, %p393_p0 }
   0xb   :  { %403 = shalt.err (!%p400_p4)
}
   0xc   :  { %s471_s21 = smov 128   ;;  %s472_s22 = smov 8  }
   0xd   :  { %34 = dma.hbm_to_vmem [thread:$0]  %s561_s1, 2048, %s29_s19, [#allocation6], %s471_s21, %s471_s21, %s472_s22  }
   0xe   :  { %s473_s25 = smov [#allocation2]   ;;  %s474_s27 = smov [#allocation7]  }
   0xf   :  { %s19_s26 = sshll.u32 %s473_s25, 4  ;;  %s42_s28 = sshll.u32 %s474_s27, 4  ;;  %s20_s26 = int_to_ptr.vmem [resolvable:$true] %s19_s26  ;;  %s43_s28 = int_to_ptr.vmem [resolvable:$true] %s42_s28 }
  0x10   :  { %s412_s29 = scalar_lea.vmem %s20_s26, 128  ;;  %p417_p6 = scmp.lt.s32.totalorder %s20_s26, %s20_s26 }
  0x11   :  { %p413_p5 = scmp.ne.s32.totalorder %s20_s26, %s412_s29  ;;  %p418_p7 = scmp.lt.s32.totalorder %s412_s29, %s412_s29 }
  0x13   :  { %p419_p8 = por %p418_p7, %p417_p6 }
  0x15   :  { %p420_p9 = pnand %p419_p8, %p413_p5 }
  0x17   :  { %423 = shalt.err (!%p420_p9)
}
  0x18   :  { %22 = dma.hbm_to_vmem [thread:$0]  %s560_s0, 128, %s20_s26, [#allocation3]  }
  0x19   :  { %s432_s7 = scalar_lea.vmem %s43_s28, 2048  ;;  %p437_p11 = scmp.lt.s32.totalorder %s43_s28, %s43_s28 }
  0x1a   :  { %p433_p10 = scmp.ne.s32.totalorder %s43_s28, %s432_s7  ;;  %p438_p12 = scmp.lt.s32.totalorder %s432_s7, %s432_s7 }
  0x1c   :  { %p439_p13 = por %p438_p12, %p437_p11 }
  0x1e   :  { %p440_p0 = pnand %p439_p13, %p433_p10 }
  0x20   :  { %443 = shalt.err (!%p440_p0)
}
  0x21   :  { %48 = dma.hbm_to_vmem [thread:$0]  %s563_s3, 2048, %s43_s28, [#allocation6], %s471_s21, %s471_s21, %s472_s22  }
  0x22   :  { %464 = dma.done.wait [#allocation3], 128  }
  0x23   :  { %465 = vsyncadd [#allocation3], 4294967168 }
  0x24   :  { %466 = dma.done.wait [#allocation6], 4096  }
  0x25   :  { %467 = vsyncadd [#allocation6], 4294963200  ;;  %v475_v0 = vmov 0.0   ;;  %vm476_vm0 = vmmov 0   ;;  %v76_v1 = vld [vmem:[#allocation5 + $0x78] sm:$0xff]  ;;  %v75_v2 = vld [vmem:[#allocation5 + $0x70] sm:$0xff] }
  0x26   :  { %302 = vmatprep.subr.mxu0 %v475_v0  ;;  %334 = vmatprep.mubr.msk.f32.mxu0 %vm476_vm0, %v475_v0  ;;  %v74_v3 = vld [vmem:[#allocation5 + $0x68] sm:$0xff]  ;;  %v73_v4 = vld [vmem:[#allocation5 + $0x60] sm:$0xff]  ;;  %v170_v5 = vld [vmem:[#allocation7 + $0x78] sm:$0xff]  ;;  %s477_s11 = smov [#allocation8]  }
  0x27   :  { %337 = vmatprep.subr.mxu1 %v475_v0  ;;  %369 = vmatprep.mubr.msk.f32.mxu1 %vm476_vm0, %v475_v0  ;;  %v72_v6 = vld [vmem:[#allocation5 + $0x58] sm:$0xff]  ;;  %v169_v7 = vld [vmem:[#allocation7 + $0x70] sm:$0xff]  ;;  %v168_v8 = vld [vmem:[#allocation7 + $0x68] sm:$0xff]  ;;  %s256_s12 = sshll.u32 %s477_s11, 4  ;;  %s257_s12 = int_to_ptr.vmem [resolvable:$true] %s256_s12 }
  0x28   :  { %303 = vmatpush3.msra.mxu0 %v76_v1  ;;  %338 = vmatpush3.msra.mxu1 %v170_v5  ;;  %v71_v9 = vld [vmem:[#allocation5 + $0x50] sm:$0xff]  ;;  %v167_v10 = vld [vmem:[#allocation7 + $0x60] sm:$0xff]  ;;  %v70_v11 = vld [vmem:[#allocation5 + $0x48] sm:$0xff]  ;;  %p449_p2 = scmp.lt.s32.totalorder %s257_s12, %s257_s12 }
  0x29   :  { %304 = vmatprep.subr.mxu0 %v475_v0  ;;  %339 = vmatprep.subr.mxu1 %v475_v0  ;;  %v166_v12 = vld [vmem:[#allocation7 + $0x58] sm:$0xff]  ;;  %v69_v13 = vld [vmem:[#allocation5 + $0x40] sm:$0xff]  ;;  %v165_v14 = vld [vmem:[#allocation7 + $0x50] sm:$0xff] }
  0x2a   :  { %305 = vmatpush3.msra.mxu0 %v75_v2  ;;  %340 = vmatpush3.msra.mxu1 %v169_v7  ;;  %v68_v15 = vld [vmem:[#allocation5 + $0x38] sm:$0xff]  ;;  %v164_v16 = vld [vmem:[#allocation7 + $0x48] sm:$0xff]  ;;  %v67_v17 = vld [vmem:[#allocation5 + $0x30] sm:$0xff] }
  0x2b   :  { %306 = vmatprep.subr.mxu0 %v475_v0  ;;  %341 = vmatprep.subr.mxu1 %v475_v0  ;;  %v66_v18 = vld [vmem:[#allocation5 + $0x28] sm:$0xff]  ;;  %v65_v19 = vld [vmem:[#allocation5 + $0x20] sm:$0xff]  ;;  %v64_v20 = vld [vmem:[#allocation5 + $0x18] sm:$0xff] }
  0x2c   :  { %307 = vmatpush3.msra.mxu0 %v74_v3  ;;  %342 = vmatpush3.msra.mxu1 %v168_v8  ;;  %v63_v21 = vld [vmem:[#allocation5 + $0x10] sm:$0xff]  ;;  %v62_v22 = vld [vmem:[#allocation5 + $0x8] sm:$0xff]  ;;  %v61_v23 = vld [vmem:[#allocation5] sm:$0xff] }
  0x2d   :  { %308 = vmatprep.subr.mxu0 %v475_v0  ;;  %343 = vmatprep.subr.mxu1 %v475_v0  ;;  %v60_v24 = vld [vmem:[#allocation2] sm:$0xff]  ;;  %v163_v25 = vld [vmem:[#allocation7 + $0x40] sm:$0xff]  ;;  %v161_v27 = vld [vmem:[#allocation7 + $0x30] sm:$0xff] }
  0x2e   :  { %309 = vmatpush3.msra.mxu0 %v73_v4  ;;  %344 = vmatpush3.msra.mxu1 %v167_v10  ;;  %v162_v26 = vld [vmem:[#allocation7 + $0x38] sm:$0xff]  ;;  %v160_v28 = vld [vmem:[#allocation7 + $0x28] sm:$0xff]  ;;  %v159_v29 = vld [vmem:[#allocation7 + $0x20] sm:$0xff] }
  0x2f   :  { %310 = vmatprep.subr.mxu0 %v475_v0  ;;  %345 = vmatprep.subr.mxu1 %v475_v0  ;;  %v158_v30 = vld [vmem:[#allocation7 + $0x18] sm:$0xff]  ;;  %v157_v31 = vld [vmem:[#allocation7 + $0x10] sm:$0xff]  ;;  %v156_v32 = vld [vmem:[#allocation7 + $0x8] sm:$0xff] }
  0x30   :  { %311 = vmatpush3.msra.mxu0 %v72_v6  ;;  %346 = vmatpush3.msra.mxu1 %v166_v12  ;;  %v155_v33 = vld [vmem:[#allocation7] sm:$0xff]  ;;  %v266_v34 = vld [vmem:[%s562_s2] ss:$0 sm:$0xff]  ;;  %s444_s2 = scalar_lea.vmem %s257_s12, 128 }
  0x31   :  { %312 = vmatprep.subr.mxu0 %v475_v0  ;;  %347 = vmatprep.subr.mxu1 %v475_v0  ;;  %v267_v39 = vld [vmem:[%s564_s4] ss:$0 sm:$0xff]  ;;  %p445_p1 = scmp.ne.s32.totalorder %s257_s12, %s444_s2  ;;  %p450_p3 = scmp.lt.s32.totalorder %s444_s2, %s444_s2 }
  0x32   :  { %313 = vmatpush3.msra.mxu0 %v71_v9  ;;  %348 = vmatpush3.msra.mxu1 %v165_v14 }
  0x33   :  { %314 = vmatprep.subr.mxu0 %v475_v0  ;;  %349 = vmatprep.subr.mxu1 %v475_v0  ;;  %p451_p4 = por %p450_p3, %p449_p2 }
  0x34   :  { %315 = vmatpush3.msra.mxu0 %v70_v11  ;;  %350 = vmatpush3.msra.mxu1 %v164_v16 }
  0x35   :  { %316 = vmatprep.subr.mxu0 %v475_v0  ;;  %351 = vmatprep.subr.mxu1 %v475_v0  ;;  %p452_p5 = pnand %p451_p4, %p445_p1 }
  0x36   :  { %317 = vmatpush3.msra.mxu0 %v69_v13  ;;  %352 = vmatpush3.msra.mxu1 %v163_v25 }
  0x37   :  { %318 = vmatprep.subr.mxu0 %v475_v0  ;;  %353 = vmatprep.subr.mxu1 %v475_v0 }
  0x38   :  { %319 = vmatpush3.msra.mxu0 %v68_v15  ;;  %354 = vmatpush3.msra.mxu1 %v162_v26 }
  0x39   :  { %320 = vmatprep.subr.mxu0 %v475_v0  ;;  %355 = vmatprep.subr.mxu1 %v475_v0 }
  0x3a   :  { %321 = vmatpush3.msra.mxu0 %v67_v17  ;;  %356 = vmatpush3.msra.mxu1 %v161_v27 }
  0x3b   :  { %322 = vmatprep.subr.mxu0 %v475_v0  ;;  %357 = vmatprep.subr.mxu1 %v475_v0 }
  0x3c   :  { %323 = vmatpush3.msra.mxu0 %v66_v18  ;;  %358 = vmatpush3.msra.mxu1 %v160_v28 }
  0x3d   :  { %324 = vmatprep.subr.mxu0 %v475_v0  ;;  %359 = vmatprep.subr.mxu1 %v475_v0 }
  0x3e   :  { %325 = vmatpush3.msra.mxu0 %v65_v19  ;;  %360 = vmatpush3.msra.mxu1 %v159_v29 }
  0x3f   :  { %326 = vmatprep.subr.mxu0 %v475_v0  ;;  %361 = vmatprep.subr.mxu1 %v475_v0 }
  0x40   :  { %327 = vmatpush3.msra.mxu0 %v64_v20  ;;  %362 = vmatpush3.msra.mxu1 %v158_v30 }
  0x41   :  { %328 = vmatprep.subr.mxu0 %v475_v0  ;;  %363 = vmatprep.subr.mxu1 %v475_v0 }
  0x42   :  { %329 = vmatpush3.msra.mxu0 %v63_v21  ;;  %364 = vmatpush3.msra.mxu1 %v157_v31 }
  0x43   :  { %330 = vmatprep.subr.mxu0 %v475_v0  ;;  %365 = vmatprep.subr.mxu1 %v475_v0 }
  0x44   :  { %331 = vmatpush3.msra.mxu0 %v62_v22  ;;  %366 = vmatpush3.msra.mxu1 %v156_v32 }
  0x45   :  { %332 = vmatprep.subr.mxu0 %v475_v0  ;;  %367 = vmatprep.subr.mxu1 %v475_v0 }
  0x46   :  { %333 = vmatpush3.msra.mxu0 %v61_v23  ;;  %368 = vmatpush3.msra.mxu1 %v155_v33 }
  0x47   :  { %335 = vmatmul.mubr.f32.vlgmr.msra.gmra.mxu0 %v60_v24 }
 0x107   :  { %v150_v35 = vpop.f32.mrf.mxu0 }
 0x108   :  { %v151_v36 = vadd.f32 %v266_v34, %v150_v35 }
 0x109   :  { %v336_v37 = vpop.f32.mrf.mxu0 }
 0x10a   :  { %380 = vtanh.f32 %v151_v36 }
 0x117   :  { %v381_v38 = vpop.eup %380 }
 0x118   :  { %370 = vmatmul.mubr.f32.vlgmr.msra.gmra.mxu1 %v381_v38 }
 0x1d8   :  { %v244_v40 = vpop.f32.mrf.mxu1 }
 0x1d9   :  { %v245_v41 = vadd.f32 %v267_v39, %v244_v40 }
 0x1da   :  { %v371_v42 = vpop.f32.mrf.mxu1 }
 0x1db   :  { %382 = vtanh.f32 %v245_v41 }
 0x1e8   :  { %v383_v43 = vpop.eup %382 }
 0x1e9   :  { %249 = vst [vmem:[#allocation8] sm:$0xff] %v383_v43 }
 0x1ea   :  { %455 = shalt.err (!%p452_p5)
}
 0x1eb   :  { %259 = dma.vmem_to_hbm [thread:$0]  %s257_s12, 128, %s565_s5, [#allocation4]  }
 0x1ec   :  { %468 = dma.done.wait [#allocation4], 128  }
 0x1ed   :  { %469 = vsyncadd [#allocation4], 4294967168 }
 0x1ee   :  { %263 = vsyncpa [#allocation3], 1 }
 0x1ef   :  { %264 = vsyncpa [#allocation6], 1 }
 0x1f0   :  { %265 = vsyncpa [#allocation4], 1 }

</bundles_post_ra>
